<compile_context>
chip_gen: v7x
topology: tpu7x:2x2x1
jax: 0.10.0
libtpu: 0.0.40
codegen_flags: <defaults>
</compile_context>

<pallas_src>
import jax
import jax.numpy as jnp
from jax.experimental import pallas as pl
from jax.experimental.pallas import tpu as pltpu


def gate_kernel(v_ref, w_ref, x_ref, o_ref):
    # Gate matvec: [1, C_in] @ [C_in, C_out] -> [1, C_out] on the MXU, f32 accumulation.
    s = jnp.dot(v_ref[...], w_ref[...], preferred_element_type=jnp.float32)
    g_row = jax.nn.sigmoid(s)                                  # [1, C_out], EUP transcendental

    c_out = o_ref.shape[0]
    # Move the gate from the lane axis to the sublane axis so it can scale the
    # channel-major activation [C_out, H*W]. Do it with a perfectly tile-aligned
    # (8, 128) -> (128, 8) transpose (single native XLU transpose), then keep one column.
    g_blk = jnp.broadcast_to(g_row, (8, c_out))                # [8, C_out]  sublane broadcast
    g_col = jnp.transpose(g_blk, (1, 0))[:, 0:1]               # [C_out, 1]

    # Per-channel gating: broadcast g_col across the H*W lane axis (VPU multiply).
    o_ref[...] = (x_ref[...] * g_col).astype(o_ref.dtype)      # [C_out, H*W]


def prepare_gate_weight(weight):
    """One-time (init-time) relayout of the 1x1-conv weight.

    [C_out, C_in, 1, 1] f32 -> [C_in, C_out] bf16.  This is a model constant; doing it
    here keeps the transpose + cast out of the per-call path entirely.
    """
    c_out, c_in = weight.shape[0], weight.shape[1]
    return jnp.asarray(weight).reshape(c_out, c_in).T.astype(jnp.bfloat16)


@jax.jit
def lraspp_gate(x185, x184, wT):
    """x185: [1, C_in, 1, 1], x184: [1, C_out, H, W], wT: [C_in, C_out] bf16 (prepared once)."""
    _, c_in, _, _ = x185.shape
    _, c_out, H, W = x184.shape

    vT = x185.reshape(1, c_in).astype(jnp.bfloat16)   # [1, C_in] row vector (~2 KiB)
    x2d = x184.reshape(c_out, H * W)                  # FREE reshape: NCHW is [C, H*W]-contiguous

    out2d = pl.pallas_call(
        gate_kernel,
        out_shape=jax.ShapeDtypeStruct((c_out, H * W), x184.dtype),
        in_specs=[
            pl.BlockSpec(memory_space=pltpu.MemorySpace.VMEM),  # vT
            pl.BlockSpec(memory_space=pltpu.MemorySpace.VMEM),  # wT
            pl.BlockSpec(memory_space=pltpu.MemorySpace.VMEM),  # x
        ],
        out_specs=pl.BlockSpec(memory_space=pltpu.MemorySpace.VMEM),
        cost_estimate=pl.CostEstimate(
            flops=2 * c_in * c_out + c_out * H * W,
            transcendentals=c_out,
            bytes_accessed=c_in * c_out * 2 + c_in * 2 + 2 * c_out * H * W * 4,
        ),
    )(vT, wT, x2d)

    return out2d.reshape(1, c_out, H, W)              # FREE reshape back to NCHW


def reference(x185, x184, weight):
    # Pure-JAX f32 reference for sanity checking.
    v = x185.reshape(x185.shape[1])
    w = weight.reshape(weight.shape[0], weight.shape[1])
    s = jax.nn.sigmoid(w @ v)                         # [C_out]
    return x184 * s[None, :, None, None]


if __name__ == "__main__":
    key = jax.random.PRNGKey(0)
    k1, k2, k3 = jax.random.split(key, 3)

    C_IN, C_OUT, H, W = 960, 128, 14, 14

    x185 = jax.random.normal(k1, (1, C_IN, 1, 1), dtype=jnp.float32)
    x184 = jax.random.normal(k2, (1, C_OUT, H, W), dtype=jnp.float32)
    # Deterministic conv weight init (~kaiming-uniform scale for fan_in=960).
    bound = 1.0 / (C_IN ** 0.5)
    weight = jax.random.uniform(
        k3, (C_OUT, C_IN, 1, 1), dtype=jnp.float32, minval=-bound, maxval=bound
    )

    # Init-time weight preparation (hoisted out of the per-call path).
    wT = jax.block_until_ready(prepare_gate_weight(weight))

    out = lraspp_gate(x185, x184, wT)
    out = jax.block_until_ready(out)

    ref = reference(x185, x184, weight)
    assert out.shape == (1, C_OUT, H, W)
    # Tolerance: the gate matvec operands are bf16 (f32 accumulate).
    assert jnp.allclose(out, ref, atol=2e-2, rtol=2e-2)

    print("KERNEL_OK")
</pallas_src>

<mosaic_0001>
module attributes {stable_mosaic.version = 11 : i64} {
  func.func @gate_kernel(%arg0: memref<1x960xbf16, #tpu.memory_space<vmem>>, %arg1: memref<960x128xbf16, #tpu.memory_space<vmem>>, %arg2: memref<128x196xf32, #tpu.memory_space<vmem>>, %arg3: memref<128x196xf32, #tpu.memory_space<vmem>>) attributes {dimension_semantics = [], scalar_prefetch = 0 : i64, scratch_operands = 0 : i64, tpu.core_type = #tpu.core_type<tc>} {
    %c0 = arith.constant 0 : index
    %c0_0 = arith.constant 0 : index
    %0 = vector.load %arg0[%c0, %c0_0] : memref<1x960xbf16, #tpu.memory_space<vmem>>, vector<1x960xbf16>
    %c0_1 = arith.constant 0 : index
    %c0_2 = arith.constant 0 : index
    %1 = vector.load %arg1[%c0_1, %c0_2] : memref<960x128xbf16, #tpu.memory_space<vmem>>, vector<960x128xbf16>
    %cst = arith.constant dense<0.000000e+00> : vector<1x128xf32>
    %2 = tpu.matmul %0, %1, %cst {dimension_numbers = #tpu.dot_dimension_numbers<[1], [0], [0], [1], [0, 0, 1, 1], [], []>} : vector<1x960xbf16>, vector<960x128xbf16>, vector<1x128xf32> -> vector<1x128xf32>
    %3 = arith.negf %2 : vector<1x128xf32>
    %4 = math.exp %3 : vector<1x128xf32>
    %cst_3 = arith.constant 1.000000e+00 : f32
    %5 = vector.broadcast %cst_3 : f32 to vector<1x128xf32>
    %6 = arith.addf %5, %4 : vector<1x128xf32>
    %7 = arith.divf %5, %6 : vector<1x128xf32>
    %8 = vector.shape_cast %7 : vector<1x128xf32> to vector<1x128xf32>
    %9 = vector.broadcast %8 : vector<1x128xf32> to vector<8x128xf32>
    %10 = tpu.transpose %9, [1, 0] : vector<8x128xf32> -> vector<128x8xf32>
    %11 = vector.extract_strided_slice %10 {offsets = [0, 0], sizes = [128, 1], strides = [1, 1]} : vector<128x8xf32> to vector<128x1xf32>
    %c0_4 = arith.constant 0 : index
    %c0_5 = arith.constant 0 : index
    %12 = vector.load %arg2[%c0_4, %c0_5] : memref<128x196xf32, #tpu.memory_space<vmem>>, vector<128x196xf32>
    %13 = vector.broadcast %11 : vector<128x1xf32> to vector<128x196xf32>
    %14 = arith.mulf %12, %13 : vector<128x196xf32>
    %c0_6 = arith.constant 0 : index
    %c0_7 = arith.constant 0 : index
    %15 = vector.load %arg3[%c0_6, %c0_7] : memref<128x196xf32, #tpu.memory_space<vmem>>, vector<128x196xf32>
    tpu.vector_store %arg3[%c0_6, %c0_7], %14 {strides = array<i32>} : memref<128x196xf32, #tpu.memory_space<vmem>>, vector<128x196xf32>,
    return
  }
}

</mosaic_0001>

<bundles_post_ra>
// kernel: lraspp_gate.1
= control target key start
LH: loop header
LB: loop body
LE: loop exit
PB: predicated region body
PF: predicated region fallthrough
CT: control target
= control target key end

     0   :  { %v1138_v1 = vmov 0   ;;  %v1139_v23 = vmov 1966171168   ;;  %v141_v25 = vlaneseq  ;;  %vm553_vm0 = vcmask 523264   ;;  %s1582_s1 = inlined_call_operand.vmem [shape: bf16[960,128], index: 1, kind: input, shape index: {}]   ;;  %s1583_s0 = inlined_call_operand.vmem [shape: bf16[1,960], index: 0, kind: input, shape index: {}]   ;;  %s1584_s2 = inlined_call_operand.vmem [shape: f32[128,196], index: 2, kind: input, shape index: {}]   ;;  %s1585_s3 = inlined_call_operand.vmem [shape: f32[128,196], index: 3, kind: output, shape index: {}]  }
   0x1   :  { %v1073_v0 = vld [vmem:[%s1582_s1 + $0x40] sm:$0xff]   ;;  %1072 = vset.pattern.permute.xlu1 %v1138_v1  ;;  %v1077_v5 = vld [vmem:[%s1582_s1 + $0x48] sm:$0xff]   ;;  %v1081_v9 = vld [vmem:[%s1582_s1 + $0x50] sm:$0xff]   ;;  %v139_v24 = vunpack.c.l.s4 %v1139_v23  ;;  %vm904_vm1 = vcmask 556032  }
   0x2   :  { %v1074_v2 = vld [vmem:[%s1582_s1 + $0xc0] sm:$0xff]   ;;  %1002 = vmatprep.subr.bf16.mxu0 %v1073_v0  ;;  %v1078_v6 = vld [vmem:[%s1582_s1 + $0xc8] sm:$0xff]   ;;  %v1082_v10 = vld [vmem:[%s1582_s1 + $0xd0] sm:$0xff]   ;;  %v1239_v31 = vshrl.u32 %v141_v25, 7 }
   0x3   :  { %v1075_v3 = vld [vmem:[%s1582_s1] sm:$0xff]   ;;  %1024 = vmatprep.subr.bf16.mxu1 %v1074_v2  ;;  %v1079_v7 = vld [vmem:[%s1582_s1 + $0x8] sm:$0xff]   ;;  %v1083_v11 = vld [vmem:[%s1582_s1 + $0x10] sm:$0xff]   ;;  %v140_v30 = vunpack.c.0.s8 %v139_v24 }
   0x4   :  { %v1076_v4 = vld [vmem:[%s1582_s1 + $0x80] sm:$0xff]   ;;  %1003 = vmatpush3.bf16.msra.mxu0 %v1075_v3  ;;  %v1080_v8 = vld [vmem:[%s1582_s1 + $0x88] sm:$0xff]   ;;  %v1084_v12 = vld [vmem:[%s1582_s1 + $0x90] sm:$0xff]  }
   0x5   :  { %1025 = vmatpush3.bf16.msra.mxu1 %v1076_v4  ;;  %1004 = vmatprep.subr.bf16.mxu0 %v1077_v5  ;;  %v1085_v13 = vld [vmem:[%s1582_s1 + $0x58] sm:$0xff]   ;;  %v1089_v17 = vld [vmem:[%s1582_s1 + $0x60] sm:$0xff]   ;;  %v1093_v21 = vld [vmem:[%s1582_s1 + $0x68] sm:$0xff]   ;;  %v1254_v36 = vsub.s32 %v140_v30, %v1239_v31 }
   0x6   :  { %1026 = vmatprep.subr.bf16.mxu1 %v1078_v6  ;;  %v1086_v14 = vld [vmem:[%s1582_s1 + $0xd8] sm:$0xff]   ;;  %v1090_v18 = vld [vmem:[%s1582_s1 + $0xe0] sm:$0xff]   ;;  %v1094_v22 = vld [vmem:[%s1582_s1 + $0xe8] sm:$0xff]  }
   0x7   :  { %v1087_v15 = vld [vmem:[%s1582_s1 + $0x18] sm:$0xff]   ;;  %v1091_v19 = vld [vmem:[%s1582_s1 + $0x20] sm:$0xff]   ;;  %v1095_v26 = vld [vmem:[%s1582_s1 + $0x28] sm:$0xff]  }
   0x8   :  { %1005 = vmatpush3.bf16.msra.mxu0 %v1079_v7  ;;  %v1088_v16 = vld [vmem:[%s1582_s1 + $0x98] sm:$0xff]   ;;  %v1092_v20 = vld [vmem:[%s1582_s1 + $0xa0] sm:$0xff]   ;;  %v1096_v27 = vld [vmem:[%s1582_s1 + $0xa8] sm:$0xff]  }
   0x9   :  { %1027 = vmatpush3.bf16.msra.mxu1 %v1080_v8  ;;  %1006 = vmatprep.subr.bf16.mxu0 %v1081_v9  ;;  %v1097_v28 = vld [vmem:[%s1582_s1 + $0x70] sm:$0xff]   ;;  %v1101_v34 = vld [vmem:[%s1582_s1 + $0x78] sm:$0xff]   ;;  %v15_v39 = vld [vmem:[%s1583_s0] sm:$0xff] }
   0xa   :  { %1028 = vmatprep.subr.bf16.mxu1 %v1082_v10  ;;  %v1098_v29 = vld [vmem:[%s1582_s1 + $0xf0] sm:$0xff]   ;;  %v1102_v35 = vld [vmem:[%s1582_s1 + $0xf8] sm:$0xff]   ;;  %v137_v40 = vcombine.high %v15_v39, %v15_v39  ;;  %v144_v41 = vrot.slane %v15_v39, %v1254_v36  ;;  %v1106_v42 = vld [vmem:[%s1582_s1 + $0x140] sm:$0xff]  }
   0xb   :  { %v1099_v32 = vld [vmem:[%s1582_s1 + $0x30] sm:$0xff]   ;;  %v1103_v37 = vld [vmem:[%s1582_s1 + $0x38] sm:$0xff]   ;;  %v1107_v47 = vld [vmem:[%s1582_s1 + $0x100] sm:$0xff]  }
   0xc   :  { %1007 = vmatpush3.bf16.msra.mxu0 %v1083_v11  ;;  %v1100_v33 = vld [vmem:[%s1582_s1 + $0xb0] sm:$0xff]   ;;  %v1104_v38 = vld [vmem:[%s1582_s1 + $0xb8] sm:$0xff]   ;;  %v152_v43 = vcombine.high %v144_v41, %v144_v41  ;;  %v160_v44 = vrot.slane %v144_v41, %v1254_v36  ;;  %v1272_v45 = vrot.slane %v137_v40, %v1254_v36  ;;  %v1109_v50 = vld [vmem:[%s1582_s1 + $0x148] sm:$0xff]  }
   0xd   :  { %1029 = vmatpush3.bf16.msra.mxu1 %v1084_v12  ;;  %1008 = vmatprep.subr.bf16.mxu0 %v1085_v13  ;;  %v1108_v52 = vld [vmem:[%s1582_s1 + $0x180] sm:$0xff]   ;;  %v1110_v54 = vld [vmem:[%s1582_s1 + $0x108] sm:$0xff]   ;;  %v1112_v56 = vld [vmem:[%s1582_s1 + $0x150] sm:$0xff]  }
   0xe   :  { %1030 = vmatprep.subr.bf16.mxu1 %v1086_v14  ;;  %v174_v46 = vrot.slane %v152_v43, %v1254_v36  ;;  %v153_v48 = vcombine.high %v1272_v45, %v1272_v45  ;;  %v182_v49 = vcombine.high %v160_v44, %v160_v44  ;;  %v1111_v57 = vld [vmem:[%s1582_s1 + $0x188] sm:$0xff]   ;;  %v1113_v58 = vld [vmem:[%s1582_s1 + $0x110] sm:$0xff]   ;;  %v1115_v59 = vld [vmem:[%s1582_s1 + $0x158] sm:$0xff]   ;;  %v167_v12 = vrot.slane %v1272_v45, %v1254_v36 }
   0xf   :  { %v1114_v60 = vld [vmem:[%s1582_s1 + $0x190] sm:$0xff]   ;;  %v1116_v61 = vld [vmem:[%s1582_s1 + $0x118] sm:$0xff]   ;;  %v1118_v62 = vld [vmem:[%s1582_s1 + $0x160] sm:$0xff]  }
  0x10   :  { %1009 = vmatpush3.bf16.msra.mxu0 %v1087_v15  ;;  %589 = vmatprep.mubr.bf16.mxu0 %v174_v46  ;;  %v184_v51 = vcombine.high %v174_v46, %v174_v46  ;;  %v181_v53 = vrot.slane %v153_v48, %v1254_v36  ;;  %v1117_v63 = vld [vmem:[%s1582_s1 + $0x198] sm:$0xff]   ;;  %v1119_v0 = vld [vmem:[%s1582_s1 + $0x120] sm:$0xff]   ;;  %v1121_v2 = vld [vmem:[%s1582_s1 + $0x168] sm:$0xff]  }
  0x11   :  { %1031 = vmatpush3.bf16.msra.mxu1 %v1088_v16  ;;  %1010 = vmatprep.subr.bf16.mxu0 %v1089_v17  ;;  %v1120_v3 = vld [vmem:[%s1582_s1 + $0x1a0] sm:$0xff]   ;;  %v1122_v4 = vld [vmem:[%s1582_s1 + $0x128] sm:$0xff]   ;;  %v1124_v5 = vld [vmem:[%s1582_s1 + $0x170] sm:$0xff]   ;;  %v183_v17 = vcombine.high %v167_v12, %v167_v12 }
  0x12   :  { %1032 = vmatprep.subr.bf16.mxu1 %v1090_v18  ;;  %629 = vmatprep.mubr.bf16.mxu1 %v184_v51  ;;  %v185_v55 = vcombine.high %v181_v53, %v181_v53  ;;  %v1123_v6 = vld [vmem:[%s1582_s1 + $0x1a8] sm:$0xff]   ;;  %v1125_v7 = vld [vmem:[%s1582_s1 + $0x130] sm:$0xff]   ;;  %v1127_v8 = vld [vmem:[%s1582_s1 + $0x178] sm:$0xff]  }
  0x13   :  { %v1126_v9 = vld [vmem:[%s1582_s1 + $0x1b0] sm:$0xff]   ;;  %v1128_v10 = vld [vmem:[%s1582_s1 + $0x138] sm:$0xff]   ;;  %v1130_v13 = vld [vmem:[%s1582_s1 + $0x1c0] sm:$0xff]  }
  0x14   :  { %1011 = vmatpush3.bf16.msra.mxu0 %v1091_v19  ;;  %v1129_v11 = vld [vmem:[%s1582_s1 + $0x1b8] sm:$0xff]   ;;  %v1131_v14 = vld [vmem:[%s1582_s1 + $0x1c8] sm:$0xff]   ;;  %v1132_v15 = vld [vmem:[%s1582_s1 + $0x1d0] sm:$0xff]  }
  0x15   :  { %1033 = vmatpush3.bf16.msra.mxu1 %v1092_v20  ;;  %1012 = vmatprep.subr.bf16.mxu0 %v1093_v21  ;;  %v1133_v16 = vld [vmem:[%s1582_s1 + $0x1d8] sm:$0xff]  }
  0x16   :  { %1034 = vmatprep.subr.bf16.mxu1 %v1094_v22 }
  0x18   :  { %1013 = vmatpush3.bf16.msra.mxu0 %v1095_v26 }
  0x19   :  { %1035 = vmatpush3.bf16.msra.mxu1 %v1096_v27  ;;  %1014 = vmatprep.subr.bf16.mxu0 %v1097_v28 }
  0x1a   :  { %1036 = vmatprep.subr.bf16.mxu1 %v1098_v29 }
  0x1c   :  { %1015 = vmatpush3.bf16.msra.mxu0 %v1099_v32 }
  0x1d   :  { %1037 = vmatpush3.bf16.msra.mxu1 %v1100_v33  ;;  %1016 = vmatprep.subr.bf16.mxu0 %v1101_v34 }
  0x1e   :  { %1038 = vmatprep.subr.bf16.mxu1 %v1102_v35 }
  0x20   :  { %1017 = vmatpush3.bf16.msra.mxu0 %v1103_v37 }
  0x21   :  { %1039 = vmatpush3.bf16.msra.mxu1 %v1104_v38  ;;  %1046 = vmatprep.subr.bf16.mxu0 %v1106_v42 }
  0x22   :  { %677 = vmatprep.subr.bf16.mxu1 %v1138_v1 }
  0x23   :  { %590 = vmatmul.mubr.bf16.vlgmr.msra.gmra.mrb[0].mxu0 %v160_v44  ;;  %v725_v44 = vsub.s32 0, %v1239_v31 }
  0x24   :  { %1047 = vmatpush3.bf16.msra.mxu0 %v1107_v47  ;;  %630 = vmatmul.mubr.bf16.vlgmr.msra.gmra.mrb[0].mxu1 %v182_v49 }
  0x25   :  { %1048 = vmatprep.subr.bf16.mxu0 %v1109_v50  ;;  %678 = vmatpush1.bf16.msra.mxu1 %v1108_v52 }
  0x26   :  { %669 = vmatprep.mubr.bf16.mxu0 %v181_v53  ;;  %679 = vmatprep.subr.bf16.mxu1 %v1138_v1 }
  0x27   :  { %1000 = vmatprep.mubr.msk.bf16.mxu1 %vm553_vm0, %v185_v55 }
  0x28   :  { %1049 = vmatpush3.bf16.msra.mxu0 %v1110_v54 }
  0x29   :  { %1050 = vmatprep.subr.bf16.mxu0 %v1112_v56  ;;  %680 = vmatpush1.bf16.msra.mxu1 %v1111_v57 }
  0x2a   :  { %681 = vmatprep.subr.bf16.mxu1 %v1138_v1 }
  0x2c   :  { %1051 = vmatpush3.bf16.msra.mxu0 %v1113_v58 }
  0x2d   :  { %1052 = vmatprep.subr.bf16.mxu0 %v1115_v59  ;;  %682 = vmatpush1.bf16.msra.mxu1 %v1114_v60 }
  0x2e   :  { %683 = vmatprep.subr.bf16.mxu1 %v1138_v1 }
  0x30   :  { %1053 = vmatpush3.bf16.msra.mxu0 %v1116_v61  ;;  %v759_v61 = vld [vmem:[%s1584_s2] sm:$0xff] }
  0x31   :  { %1054 = vmatprep.subr.bf16.mxu0 %v1118_v62  ;;  %684 = vmatpush1.bf16.msra.mxu1 %v1117_v63  ;;  %v760_v62 = vld [vmem:[%s1584_s2 + $0x8] sm:$0xff] }
  0x32   :  { %685 = vmatprep.subr.bf16.mxu1 %v1138_v1 }
  0x34   :  { %1055 = vmatpush3.bf16.msra.mxu0 %v1119_v0 }
  0x35   :  { %1056 = vmatprep.subr.bf16.mxu0 %v1121_v2  ;;  %686 = vmatpush1.bf16.msra.mxu1 %v1120_v3  ;;  %v761_v3 = vld [vmem:[%s1584_s2 + $0x10] sm:$0xff] }
  0x36   :  { %687 = vmatprep.subr.bf16.mxu1 %v1138_v1 }
  0x38   :  { %1057 = vmatpush3.bf16.msra.mxu0 %v1122_v4  ;;  %v762_v4 = vld [vmem:[%s1584_s2 + $0x18] sm:$0xff] }
  0x39   :  { %1058 = vmatprep.subr.bf16.mxu0 %v1124_v5  ;;  %688 = vmatpush1.bf16.msra.mxu1 %v1123_v6 }
  0x3a   :  { %689 = vmatprep.subr.bf16.mxu1 %v1138_v1 }
  0x3c   :  { %1059 = vmatpush3.bf16.msra.mxu0 %v1125_v7 }
  0x3d   :  { %1060 = vmatprep.subr.bf16.mxu0 %v1127_v8  ;;  %690 = vmatpush1.bf16.msra.mxu1 %v1126_v9  ;;  %v763_v8 = vld [vmem:[%s1584_s2 + $0x20] sm:$0xff]  ;;  %v764_v9 = vld [vmem:[%s1584_s2 + $0x28] sm:$0xff] }
  0x3e   :  { %691 = vmatprep.subr.bf16.mxu1 %v1138_v1 }
  0x40   :  { %1061 = vmatpush3.bf16.msra.mxu0 %v1128_v10 }
  0x41   :  { %692 = vmatpush1.bf16.msra.mxu1 %v1129_v11 }
  0x42   :  { %693 = vmatprep.subr.bf16.mxu1 %v1138_v1 }
  0x43   :  { %670 = vmatmul.mubr.bf16.vlgmr.msra.gmra.mrb[4].mxu0 %v167_v12 }
  0x45   :  { %694 = vmatpush1.bf16.msra.mxu1 %v1130_v13  ;;  %v765_v13 = vld [vmem:[%s1584_s2 + $0x30] sm:$0xff] }
  0x46   :  { %695 = vmatprep.subr.bf16.mxu1 %v1138_v1 }
  0x49   :  { %696 = vmatpush1.bf16.msra.mxu1 %v1131_v14  ;;  %v766_v14 = vld [vmem:[%s1584_s2 + $0x38] sm:$0xff] }
  0x4a   :  { %697 = vmatprep.subr.bf16.mxu1 %v1138_v1 }
  0x4d   :  { %698 = vmatpush1.bf16.msra.mxu1 %v1132_v15 }
  0x4e   :  { %699 = vmatprep.subr.bf16.mxu1 %v1138_v1 }
  0x51   :  { %700 = vmatpush1.bf16.msra.mxu1 %v1133_v16 }
  0x54   :  { %710 = vmatmul.mubr.bf16.vlgmr.msra.gmra.mrb[4].mxu1 %v183_v17 }
  0xf6   :  { %v1018_v18 = vpop.f32.mrb[0].mxu0 }
  0xf7   :  { %v1019_v19 = vpop.f32.mrb[1].mxu0  ;;  %v1040_v20 = vpop.f32.mrb[0].mxu1 }
  0xf8   :  { %v1020_v21 = vadd.f32 %v1019_v19, %v1018_v18  ;;  %v1021_v22 = vpop.f32.mrb[2].mxu0  ;;  %v1041_v23 = vpop.f32.mrb[1].mxu1  ;;  %v767_v18 = vld [vmem:[%s1584_s2 + $0x40] sm:$0xff]  ;;  %v768_v19 = vld [vmem:[%s1584_s2 + $0x48] sm:$0xff] }
  0xf9   :  { %v1022_v24 = vpop.f32.mrb[3].mxu0  ;;  %v1042_v25 = vadd.f32 %v1041_v23, %v1040_v20  ;;  %v1043_v26 = vpop.f32.mrb[2].mxu1  ;;  %v769_v23 = vld [vmem:[%s1584_s2 + $0x50] sm:$0xff] }
  0xfa   :  { %v1044_v27 = vpop.f32.mrb[3].mxu1  ;;  %v770_v24 = vld [vmem:[%s1584_s2 + $0x58] sm:$0xff] }
  0xfb   :  { %v632_v28 = vadd.f32 %v1042_v25, %v1020_v21 }
 0x116   :  { %v1062_v29 = vpop.f32.mrb[4].mxu0 }
 0x117   :  { %v1063_v30 = vpop.f32.mrb[5].mxu0 }
 0x118   :  { %v1064_v32 = vadd.f32 %v1063_v30, %v1062_v29  ;;  %v1065_v33 = vpop.f32.mrb[6].mxu0  ;;  %v772_v29 = vld [vmem:[%s1584_s2 + $0x68] sm:$0xff] }
 0x119   :  { %v1066_v34 = vpop.f32.mrb[7].mxu0 }
 0x11a   :  { %v672_v35 = vadd.f32 %v1064_v32, %v632_v28  ;;  %v771_v28 = vld [vmem:[%s1584_s2 + $0x60] sm:$0xff]  ;;  %v773_v34 = vld [vmem:[%s1584_s2 + $0x70] sm:$0xff] }
 0x127   :  { %v711_v36 = vpop.f32.mrb[4].mxu1 }
 0x128   :  { %v712_v37 = vadd.f32 %v711_v36, %v672_v35  ;;  %v713_v38 = vpop.f32.mrb[5].mxu1  ;;  %v774_v35 = vld [vmem:[%s1584_s2 + $0x78] sm:$0xff] }
 0x129   :  { %v714_v39 = vpop.f32.mrb[6].mxu1 }
 0x12a   :  { %v1001_v40 = vmul.f32 -1.442695, %v712_v37  ;;  %v715_v41 = vpop.f32.mrb[7].mxu1  ;;  %v775_v39 = vld [vmem:[%s1584_s2 + $0x80] sm:$0xff] }
 0x12c   :  { %1134 = vpow2.f32 %v1001_v40  ;;  %v776_v40 = vld [vmem:[%s1584_s2 + $0x88] sm:$0xff] }
 0x136   :  { %v1135_v42 = vpop.eup %1134 }
 0x137   :  { %v720_v43 = vadd.f32 1.0, %v1135_v42 }
 0x139   :  { %1136 = vrcp.f32 %v720_v43 }
 0x143   :  { %v1137_v45 = vpop.eup %1136 }
 0x144   :  { %v726_v46 = vrot.slane %v1137_v45, %v725_v44  ;;  %v777_v44 = vld [vmem:[%s1584_s2 + $0x90] sm:$0xff]  ;;  %v778_v45 = vld [vmem:[%s1584_s2 + $0x98] sm:$0xff] }
 0x146   :  { %727 = vxpose.xlu0.b32.start.end [1/1] (short) %v726_v46, 128 }
 0x16f   :  { %1071 = vset.pattern.permute.xlu0 %v1138_v1 }
 0x1c6   :  { %v743_v47 = vpop.trf.xlu0 }
 0x1c7   :  { %793 = vperm.xlu0 %1071, %v743_v47  }
 0x1ca   :  { %v744_v48 = vpop.trf.xlu0 }
 0x1cb   :  { %798 = vperm.xlu1 %1072, %v744_v48  }
 0x1ce   :  { %v745_v49 = vpop.trf.xlu0 }
 0x1cf   :  { %803 = vperm.xlu1 %1072, %v745_v49   ;;  %v779_v49 = vld [vmem:[%s1584_s2 + $0xa0] sm:$0xff] }
 0x1d2   :  { %v746_v50 = vpop.trf.xlu0 }
 0x1d3   :  { %808 = vperm.xlu1 %1072, %v746_v50   ;;  %v780_v50 = vld [vmem:[%s1584_s2 + $0xa8] sm:$0xff] }
 0x1d6   :  { %v747_v51 = vpop.trf.xlu0 }
 0x1d7   :  { %813 = vperm.xlu1 %1072, %v747_v51  }
 0x1da   :  { %v748_v52 = vpop.trf.xlu0 }
 0x1db   :  { %818 = vperm.xlu1 %1072, %v748_v52  }
 0x1de   :  { %v749_v53 = vpop.trf.xlu0 }
 0x1df   :  { %823 = vperm.xlu1 %1072, %v749_v53  }
 0x1e2   :  { %v750_v31 = vpop.trf.xlu0 }
 0x1e3   :  { %828 = vperm.xlu1 %1072, %v750_v31   ;;  %v781_v31 = vld [vmem:[%s1584_s2 + $0xb0] sm:$0xff] }
 0x1e6   :  { %v751_v54 = vpop.trf.xlu0 }
 0x1e7   :  { %833 = vperm.xlu1 %1072, %v751_v54   ;;  %v782_v54 = vld [vmem:[%s1584_s2 + $0xb8] sm:$0xff] }
 0x1ea   :  { %v752_v55 = vpop.trf.xlu0 }
 0x1eb   :  { %838 = vperm.xlu1 %1072, %v752_v55  }
 0x1ee   :  { %v753_v1 = vpop.trf.xlu0 }
 0x1ef   :  { %843 = vperm.xlu1 %1072, %v753_v1  }
 0x1f2   :  { %v754_v56 = vpop.trf.xlu0 }
 0x1f3   :  { %848 = vperm.xlu1 %1072, %v754_v56  }
 0x1f6   :  { %v755_v57 = vpop.trf.xlu0 }
 0x1f7   :  { %853 = vperm.xlu1 %1072, %v755_v57   ;;  %v783_v57 = vld [vmem:[%s1584_s2 + $0xc0] sm:$0xff] }
 0x1fa   :  { %v756_v58 = vpop.trf.xlu0 }
 0x1fb   :  { %858 = vperm.xlu1 %1072, %v756_v58   ;;  %v784_v58 = vld [vmem:[%s1584_s2 + $0xc8] sm:$0xff] }
 0x1fe   :  { %v757_v59 = vpop.trf.xlu0 }
 0x1ff   :  { %863 = vperm.xlu1 %1072, %v757_v59  }
 0x202   :  { %v758_v60 = vpop.trf.xlu0 }
 0x203   :  { %868 = vperm.xlu1 %1072, %v758_v60  }
 0x246   :  { %v794_v63 = vpop.permute.xlu0 %793 }
 0x247   :  { %v871_v0 = vmul.f32 %v794_v63, %v759_v61  ;;  %v872_v2 = vmul.f32 %v794_v63, %v760_v62  ;;  %v785_v62 = vld [vmem:[%s1584_s2 + $0xd0] sm:$0xff]  ;;  %v786_v63 = vld [vmem:[%s1584_s2 + $0xd8] sm:$0xff] }
 0x249   :  { %903 = vst [vmem:[%s1585_s3] sm:$0xff] %v871_v0  ;;  %905 = vst.msk [vmem:[%s1585_s3 + $0x8] sm:$0xff] %vm904_vm1, %v872_v2 }
 0x24a   :  { %v799_v5 = vpop.permute.xlu1 %798 }
 0x24b   :  { %v873_v6 = vmul.f32 %v799_v5, %v761_v3  ;;  %v874_v7 = vmul.f32 %v799_v5, %v762_v4  ;;  %v787_v4 = vld [vmem:[%s1584_s2 + $0xe0] sm:$0xff]  ;;  %v788_v5 = vld [vmem:[%s1584_s2 + $0xe8] sm:$0xff] }
 0x24d   :  { %906 = vst [vmem:[%s1585_s3 + $0x10] sm:$0xff] %v873_v6  ;;  %907 = vst.msk [vmem:[%s1585_s3 + $0x18] sm:$0xff] %vm904_vm1, %v874_v7 }
 0x24e   :  { %v804_v10 = vpop.permute.xlu1 %803 }
 0x24f   :  { %v875_v11 = vmul.f32 %v804_v10, %v763_v8  ;;  %v876_v12 = vmul.f32 %v804_v10, %v764_v9  ;;  %v789_v9 = vld [vmem:[%s1584_s2 + $0xf0] sm:$0xff]  ;;  %v790_v10 = vld [vmem:[%s1584_s2 + $0xf8] sm:$0xff] }
 0x251   :  { %908 = vst [vmem:[%s1585_s3 + $0x20] sm:$0xff] %v875_v11  ;;  %909 = vst.msk [vmem:[%s1585_s3 + $0x28] sm:$0xff] %vm904_vm1, %v876_v12 }
 0x252   :  { %v809_v15 = vpop.permute.xlu1 %808 }
 0x253   :  { %v877_v16 = vmul.f32 %v809_v15, %v765_v13  ;;  %v878_v17 = vmul.f32 %v809_v15, %v766_v14 }
 0x255   :  { %910 = vst [vmem:[%s1585_s3 + $0x30] sm:$0xff] %v877_v16  ;;  %911 = vst.msk [vmem:[%s1585_s3 + $0x38] sm:$0xff] %vm904_vm1, %v878_v17 }
 0x256   :  { %v814_v20 = vpop.permute.xlu1 %813 }
 0x257   :  { %v879_v21 = vmul.f32 %v814_v20, %v767_v18  ;;  %v880_v22 = vmul.f32 %v814_v20, %v768_v19 }
 0x259   :  { %912 = vst [vmem:[%s1585_s3 + $0x40] sm:$0xff] %v879_v21  ;;  %913 = vst.msk [vmem:[%s1585_s3 + $0x48] sm:$0xff] %vm904_vm1, %v880_v22 }
 0x25a   :  { %v819_v25 = vpop.permute.xlu1 %818 }
 0x25b   :  { %v881_v26 = vmul.f32 %v819_v25, %v769_v23  ;;  %v882_v27 = vmul.f32 %v819_v25, %v770_v24 }
 0x25d   :  { %914 = vst [vmem:[%s1585_s3 + $0x50] sm:$0xff] %v881_v26  ;;  %915 = vst.msk [vmem:[%s1585_s3 + $0x58] sm:$0xff] %vm904_vm1, %v882_v27 }
 0x25e   :  { %v824_v30 = vpop.permute.xlu1 %823 }
 0x25f   :  { %v883_v32 = vmul.f32 %v824_v30, %v771_v28  ;;  %v884_v33 = vmul.f32 %v824_v30, %v772_v29 }
 0x261   :  { %916 = vst [vmem:[%s1585_s3 + $0x60] sm:$0xff] %v883_v32  ;;  %917 = vst.msk [vmem:[%s1585_s3 + $0x68] sm:$0xff] %vm904_vm1, %v884_v33 }
 0x262   :  { %v829_v36 = vpop.permute.xlu1 %828 }
 0x263   :  { %v885_v37 = vmul.f32 %v829_v36, %v773_v34  ;;  %v886_v38 = vmul.f32 %v829_v36, %v774_v35 }
 0x265   :  { %918 = vst [vmem:[%s1585_s3 + $0x70] sm:$0xff] %v885_v37  ;;  %919 = vst.msk [vmem:[%s1585_s3 + $0x78] sm:$0xff] %vm904_vm1, %v886_v38 }
 0x266   :  { %v834_v41 = vpop.permute.xlu1 %833 }
 0x267   :  { %v887_v42 = vmul.f32 %v834_v41, %v775_v39  ;;  %v888_v43 = vmul.f32 %v834_v41, %v776_v40 }
 0x269   :  { %920 = vst [vmem:[%s1585_s3 + $0x80] sm:$0xff] %v887_v42  ;;  %921 = vst.msk [vmem:[%s1585_s3 + $0x88] sm:$0xff] %vm904_vm1, %v888_v43 }
 0x26a   :  { %v839_v46 = vpop.permute.xlu1 %838 }
 0x26b   :  { %v889_v47 = vmul.f32 %v839_v46, %v777_v44  ;;  %v890_v48 = vmul.f32 %v839_v46, %v778_v45 }
 0x26d   :  { %922 = vst [vmem:[%s1585_s3 + $0x90] sm:$0xff] %v889_v47  ;;  %923 = vst.msk [vmem:[%s1585_s3 + $0x98] sm:$0xff] %vm904_vm1, %v890_v48 }
 0x26e   :  { %v844_v51 = vpop.permute.xlu1 %843 }
 0x26f   :  { %v891_v52 = vmul.f32 %v844_v51, %v779_v49  ;;  %v892_v53 = vmul.f32 %v844_v51, %v780_v50 }
 0x271   :  { %924 = vst [vmem:[%s1585_s3 + $0xa0] sm:$0xff] %v891_v52  ;;  %925 = vst.msk [vmem:[%s1585_s3 + $0xa8] sm:$0xff] %vm904_vm1, %v892_v53 }
 0x272   :  { %v849_v55 = vpop.permute.xlu1 %848 }
 0x273   :  { %v893_v1 = vmul.f32 %v849_v55, %v781_v31  ;;  %v894_v56 = vmul.f32 %v849_v55, %v782_v54 }
 0x275   :  { %926 = vst [vmem:[%s1585_s3 + $0xb0] sm:$0xff] %v893_v1  ;;  %927 = vst.msk [vmem:[%s1585_s3 + $0xb8] sm:$0xff] %vm904_vm1, %v894_v56 }
 0x276   :  { %v854_v59 = vpop.permute.xlu1 %853 }
 0x277   :  { %v895_v60 = vmul.f32 %v854_v59, %v783_v57  ;;  %v896_v61 = vmul.f32 %v854_v59, %v784_v58 }
 0x279   :  { %928 = vst [vmem:[%s1585_s3 + $0xc0] sm:$0xff] %v895_v60  ;;  %929 = vst.msk [vmem:[%s1585_s3 + $0xc8] sm:$0xff] %vm904_vm1, %v896_v61 }
 0x27a   :  { %v859_v0 = vpop.permute.xlu1 %858 }
 0x27b   :  { %v897_v2 = vmul.f32 %v859_v0, %v785_v62  ;;  %v898_v3 = vmul.f32 %v859_v0, %v786_v63 }
 0x27d   :  { %930 = vst [vmem:[%s1585_s3 + $0xd0] sm:$0xff] %v897_v2  ;;  %931 = vst.msk [vmem:[%s1585_s3 + $0xd8] sm:$0xff] %vm904_vm1, %v898_v3 }
 0x27e   :  { %v864_v6 = vpop.permute.xlu1 %863 }
 0x27f   :  { %v899_v7 = vmul.f32 %v864_v6, %v787_v4  ;;  %v900_v8 = vmul.f32 %v864_v6, %v788_v5 }
 0x281   :  { %932 = vst [vmem:[%s1585_s3 + $0xe0] sm:$0xff] %v899_v7  ;;  %933 = vst.msk [vmem:[%s1585_s3 + $0xe8] sm:$0xff] %vm904_vm1, %v900_v8 }
 0x282   :  { %v869_v11 = vpop.permute.xlu1 %868 }
 0x283   :  { %v901_v12 = vmul.f32 %v869_v11, %v789_v9  ;;  %v902_v13 = vmul.f32 %v869_v11, %v790_v10 }
 0x285   :  { %934 = vst [vmem:[%s1585_s3 + $0xf0] sm:$0xff] %v901_v12  ;;  %935 = vst.msk [vmem:[%s1585_s3 + $0xf8] sm:$0xff] %vm904_vm1, %v902_v13 }

</bundles_post_ra>
